<compile_context>
chip_gen: v5e
topology: v5e:2x2
jax: 0.10.0
libtpu: 0.0.40
codegen_flags: <defaults>
</compile_context>

<pallas_src>
import functools

import jax
import jax.numpy as jnp
from jax import lax
from jax.experimental import pallas as pl
from jax.experimental.pallas import tpu as pltpu


# ----------------------------------------------------------------------------
# Pallas kernel: one (TQ, C) query tile of one batch element.
# ----------------------------------------------------------------------------
def _nonlocal_kernel(x_ref,        # (TQ, Cp)     full-res token tile (f32)
                     xp_ref,       # (Np, Cp)     pooled tokens, resident per batch
                     w_theta_ref,  # (Cp, Cip)    bf16, scale folded in
                     b_theta_ref,  # (1, Cip)     f32, scale folded in
                     w_pg_ref,     # (Cp, 2*Cip)  bf16, [phi | g]
                     b_pg_ref,     # (1, 2*Cip)   f32
                     w_out_ref,    # (Cip, Cp)    bf16
                     b_out_ref,    # (1, Cp)      f32
                     bn_scale_ref, # (1, Cp)      gamma / sqrt(var + eps)
                     bn_shift_ref, # (1, Cp)      beta - mean * scale
                     z_ref,        # (TQ, Cp)     output tile
                     phi_scr,      # (Np, Cip)    bf16 scratch (persistent)
                     g_scr,        # (Np, Cip)    bf16 scratch (persistent)
                     *, ci):
    bf16 = jnp.bfloat16

    # Compute phi / g once per batch element; reuse across all query tiles.
    @pl.when(pl.program_id(1) == 0)
    def _():
        xp = xp_ref[...].astype(bf16)
        pg = jnp.dot(xp, w_pg_ref[...],
                     preferred_element_type=jnp.float32) + b_pg_ref[...]
        phi_scr[...] = pg[:, :ci].astype(bf16)
        g_scr[...] = pg[:, ci:].astype(bf16)

    x = x_ref[...]                                             # f32 (TQ, Cp)

    # theta projection (scale already folded into weights/bias).
    theta = jnp.dot(x.astype(bf16), w_theta_ref[...],
                    preferred_element_type=jnp.float32) + b_theta_ref[...]

    # f = theta @ phi^T without materializing a transpose (contract last dims).
    f = lax.dot_general(theta.astype(bf16), phi_scr[...],
                        dimension_numbers=(((1,), (1,)), ((), ())),
                        preferred_element_type=jnp.float32)    # (TQ, Np)

    # Numerically stable softmax; divide -> EUP reciprocal + multiply.
    f = f - jnp.max(f, axis=-1, keepdims=True)
    p = jnp.exp(f)
    inv = pl.reciprocal(jnp.sum(p, axis=-1, keepdims=True), approx=True)
    p = (p * inv).astype(bf16)

    # y = softmax(f) @ g
    y = jnp.dot(p, g_scr[...], preferred_element_type=jnp.float32)  # (TQ, Cip)

    # Output 1x1 conv, eval-mode BatchNorm affine, residual — all f32 epilogue.
    w_y = jnp.dot(y.astype(bf16), w_out_ref[...],
                  preferred_element_type=jnp.float32) + b_out_ref[...]
    w_y = w_y * bn_scale_ref[...] + bn_shift_ref[...]
    z_ref[...] = (w_y + x).astype(z_ref.dtype)


def _round_up(x, m):
    return (x + m - 1) // m * m


# ----------------------------------------------------------------------------
# Wrapper: NCHW in / NCHW out.
# ----------------------------------------------------------------------------
def non_local_block_2d(x, params, *, head=1, use_scale=True, bn_eps=1e-5,
                       tq=None):
    assert head == 1  # TODO(synk): multi-head channel split not implemented (default head=1)
    B, C, H, W = x.shape
    Ci = params["w_theta"].shape[1]
    N = H * W

    # sub_sample=True -> MaxPool2d(kernel_size=2) before phi and g.
    # TODO(synk): pool + NCHW<->(B,N,C) transposes run as XLA glue; an
    # NHWC-native interface would avoid this extra HBM traffic.
    xp = x.reshape(B, C, H // 2, 2, W // 2, 2).max(axis=(3, 5))
    Np = (H // 2) * (W // 2)

    x_flat = jnp.transpose(x.reshape(B, C, N), (0, 2, 1))        # (B, N, C)
    xp_flat = jnp.transpose(xp.reshape(B, C, Np), (0, 2, 1))     # (B, Np, C)

    # Pad channel dims to lane width (128): lane-dense loads/stores, MXU-aligned
    # matmul dims.  Zero padding keeps the math exact; output is sliced back.
    Cp = _round_up(C, 128)
    Cip = _round_up(Ci, 128)
    pc, pci = Cp - C, Cip - Ci

    x_flat = jnp.pad(x_flat, ((0, 0), (0, 0), (0, pc)))
    xp_flat = jnp.pad(xp_flat, ((0, 0), (0, 0), (0, pc)))

    scale = float(Ci // head) ** (-0.5) if use_scale else 1.0

    # Fold the attention scale into theta; fuse phi & g into one projection.
    w_theta = jnp.pad(params["w_theta"] * scale, ((0, pc), (0, pci)))
    b_theta = jnp.pad(params["b_theta"] * scale, ((0, 0), (0, pci)))
    w_phi = jnp.pad(params["w_phi"], ((0, pc), (0, pci)))
    b_phi = jnp.pad(params["b_phi"], ((0, 0), (0, pci)))
    w_g = jnp.pad(params["w_g"], ((0, pc), (0, pci)))
    b_g = jnp.pad(params["b_g"], ((0, 0), (0, pci)))
    w_pg = jnp.concatenate([w_phi, w_g], axis=1)                 # (Cp, 2*Cip)
    b_pg = jnp.concatenate([b_phi, b_g], axis=1)                 # (1, 2*Cip)
    w_out = jnp.pad(params["w_out"], ((0, pci), (0, pc)))
    b_out = jnp.pad(params["b_out"], ((0, 0), (0, pc)))

    # TODO(synk): BatchNorm applied in eval mode (running stats), not train-mode batch stats.
    bn_scale = params["bn_gamma"] / jnp.sqrt(params["bn_var"] + bn_eps)
    bn_shift = params["bn_beta"] - params["bn_mean"] * bn_scale
    bn_scale = jnp.pad(bn_scale, ((0, 0), (0, pc)))
    bn_shift = jnp.pad(bn_shift, ((0, 0), (0, pc)))

    # bf16 MXU operands (accumulation in f32 inside the kernel).
    bf16 = jnp.bfloat16
    w_theta = w_theta.astype(bf16)
    w_pg = w_pg.astype(bf16)
    w_out = w_out.astype(bf16)

    # Query-tile size (bounds VMEM to ~TQ*Np + TQ*Cp + Np*Cip activations).
    if tq is None:
        tq = min(N, 512)
    assert N % tq == 0 and tq % 8 == 0
    n_q = N // tq

    kernel = functools.partial(_nonlocal_kernel, ci=Cip)

    full = lambda shape: pl.BlockSpec(shape, lambda b, q: (0,) * len(shape))

    flops = 2 * B * (N * Cp * Cip          # theta proj
                     + Np * Cp * 2 * Cip   # fused phi/g proj
                     + 2 * N * Np * Cip    # QK^T and PV
                     + N * Cip * Cp)       # out proj
    bytes_accessed = 4 * B * (2 * N * Cp + Np * Cp) \
        + 2 * (Cp * Cip + Cp * 2 * Cip + Cip * Cp) + 4 * 6 * Cp
    cost = pl.CostEstimate(flops=flops,
                           transcendentals=B * N * (Np + 1),
                           bytes_accessed=bytes_accessed)

    z_flat = pl.pallas_call(
        kernel,
        out_shape=jax.ShapeDtypeStruct((B, N, Cp), x.dtype),
        grid=(B, n_q),
        in_specs=[
            pl.BlockSpec((None, tq, Cp), lambda b, q: (b, q, 0)),   # x tile
            pl.BlockSpec((None, Np, Cp), lambda b, q: (b, 0, 0)),   # xp resident
            full((Cp, Cip)), full((1, Cip)),                        # theta
            full((Cp, 2 * Cip)), full((1, 2 * Cip)),                # phi+g fused
            full((Cip, Cp)), full((1, Cp)),                         # out proj
            full((1, Cp)), full((1, Cp)),                           # bn affine
        ],
        out_specs=pl.BlockSpec((None, tq, Cp), lambda b, q: (b, q, 0)),
        scratch_shapes=[pltpu.VMEM((Np, Cip), bf16),                # phi cache
                        pltpu.VMEM((Np, Cip), bf16)],               # g cache
        compiler_params=pltpu.CompilerParams(
            # batch axis -> megacore parallel; q axis sequential (scratch carry).
            dimension_semantics=("parallel", "arbitrary"),
            vmem_limit_bytes=32 * 1024 * 1024),
        cost_estimate=cost,
    )(x_flat, xp_flat, w_theta, b_theta, w_pg, b_pg, w_out, b_out,
      bn_scale, bn_shift)

    # Strip channel padding, back to NCHW.
    z_flat = z_flat[..., :C]
    return jnp.transpose(z_flat, (0, 2, 1)).reshape(B, C, H, W)


# ----------------------------------------------------------------------------
# Pure-JAX f32 reference (correctness check).
# ----------------------------------------------------------------------------
def non_local_ref(x, params, *, use_scale=True, bn_eps=1e-5):
    B, C, H, W = x.shape
    Ci = params["w_theta"].shape[1]
    xp = x.reshape(B, C, H // 2, 2, W // 2, 2).max(axis=(3, 5))
    x_flat = jnp.transpose(x.reshape(B, C, -1), (0, 2, 1))
    xp_flat = jnp.transpose(xp.reshape(B, C, -1), (0, 2, 1))

    theta = x_flat @ params["w_theta"] + params["b_theta"]
    phi = xp_flat @ params["w_phi"] + params["b_phi"]
    g = xp_flat @ params["w_g"] + params["b_g"]

    f = jnp.einsum("bnc,bmc->bnm", theta, phi)
    if use_scale:
        f = f * (Ci ** -0.5)
    f = jax.nn.softmax(f, axis=-1)
    y = jnp.einsum("bnm,bmc->bnc", f, g)

    wy = y @ params["w_out"] + params["b_out"]
    bn_scale = params["bn_gamma"] / jnp.sqrt(params["bn_var"] + bn_eps)
    bn_shift = params["bn_beta"] - params["bn_mean"] * bn_scale
    wy = wy * bn_scale + bn_shift
    z = wy + x_flat
    return jnp.transpose(z, (0, 2, 1)).reshape(B, C, H, W)


# ----------------------------------------------------------------------------
# Deterministic parameters (shapes from _NonLocalBlockND.__init__).
# ----------------------------------------------------------------------------
def make_params(key, in_channels, inter_channels):
    C, Ci = in_channels, inter_channels
    ks = jax.random.split(key, 8)
    f32 = jnp.float32
    return {
        "w_theta": 0.05 * jax.random.normal(ks[0], (C, Ci), f32),
        "b_theta": 0.01 * jax.random.normal(ks[1], (1, Ci), f32),
        "w_phi":   0.05 * jax.random.normal(ks[2], (C, Ci), f32),
        "b_phi":   0.01 * jax.random.normal(ks[3], (1, Ci), f32),
        "w_g":     0.05 * jax.random.normal(ks[4], (C, Ci), f32),
        "b_g":     0.01 * jax.random.normal(ks[5], (1, Ci), f32),
        "w_out":   0.05 * jax.random.normal(ks[6], (Ci, C), f32),
        "b_out":   0.01 * jax.random.normal(ks[7], (1, C), f32),
        # BatchNorm2d(in_channels): affine + running stats (eval mode).
        "bn_gamma": jnp.ones((1, C), f32),
        "bn_beta":  jnp.zeros((1, C), f32),
        "bn_mean":  jnp.zeros((1, C), f32),
        "bn_var":   jnp.ones((1, C), f32),
    }


if __name__ == "__main__":
    B, C, H, W = 2, 4, 16, 16          # in_channels=4 -> inter_channels=2
    inter_channels = C // 2

    key = jax.random.PRNGKey(0)
    k_x, k_p = jax.random.split(key)
    x = jax.random.normal(k_x, (B, C, H, W), jnp.float32)
    params = make_params(k_p, C, inter_channels)

    # tq=64 -> 4 query tiles per image: exercises the q-tiling + scratch reuse.
    z = non_local_block_2d(x, params, tq=64)
    z = jax.block_until_ready(z)

    z_ref = non_local_ref(x, params)
    assert z.shape == (B, C, H, W)
    assert bool(jnp.all(jnp.isfinite(z)))
    max_err = float(jnp.max(jnp.abs(z - z_ref)))
    # bf16 MXU operands + approx reciprocal -> slightly looser tolerance.
    assert bool(jnp.allclose(z, z_ref, rtol=2e-2, atol=5e-3)), max_err

    print("KERNEL_OK")
</pallas_src>

<mosaic_0001>
module attributes {stable_mosaic.version = 11 : i64} {
  func.func @_nonlocal_kernel(%arg0: i32, %arg1: i32, %arg2: memref<1x64x128xf32, #tpu.memory_space<vmem>>, %arg3: memref<1x64x128xf32, #tpu.memory_space<vmem>>, %arg4: memref<128x128xbf16, #tpu.memory_space<vmem>>, %arg5: memref<1x128xf32, #tpu.memory_space<vmem>>, %arg6: memref<128x256xbf16, #tpu.memory_space<vmem>>, %arg7: memref<1x256xf32, #tpu.memory_space<vmem>>, %arg8: memref<128x128xbf16, #tpu.memory_space<vmem>>, %arg9: memref<1x128xf32, #tpu.memory_space<vmem>>, %arg10: memref<1x128xf32, #tpu.memory_space<vmem>>, %arg11: memref<1x128xf32, #tpu.memory_space<vmem>>, %arg12: memref<1x64x128xf32, #tpu.memory_space<vmem>>, %arg13: memref<64x128xbf16, #tpu.memory_space<vmem>>, %arg14: memref<64x128xbf16, #tpu.memory_space<vmem>>) attributes {dimension_semantics = [#tpu.dimension_semantics<parallel>, #tpu.dimension_semantics<arbitrary>], iteration_bounds = array<i64: 2, 4>, scalar_prefetch = 0 : i64, scratch_operands = 2 : i64, tpu.core_type = #tpu.core_type<tc>, window_params = [{transform_indices = @transform_0, window_bounds = array<i64: 1, 64, 128>}, {transform_indices = @transform_1, window_bounds = array<i64: 1, 64, 128>}, {pipeline_mode = #tpu.pipeline_mode<synchronous>, transform_indices = @transform_2, window_bounds = array<i64: 128, 128>}, {pipeline_mode = #tpu.pipeline_mode<synchronous>, transform_indices = @transform_3, window_bounds = array<i64: 1, 128>}, {pipeline_mode = #tpu.pipeline_mode<synchronous>, transform_indices = @transform_4, window_bounds = array<i64: 128, 256>}, {pipeline_mode = #tpu.pipeline_mode<synchronous>, transform_indices = @transform_5, window_bounds = array<i64: 1, 256>}, {pipeline_mode = #tpu.pipeline_mode<synchronous>, transform_indices = @transform_6, window_bounds = array<i64: 128, 128>}, {pipeline_mode = #tpu.pipeline_mode<synchronous>, transform_indices = @transform_7, window_bounds = array<i64: 1, 128>}, {pipeline_mode = #tpu.pipeline_mode<synchronous>, transform_indices = @transform_8, window_bounds = array<i64: 1, 128>}, {pipeline_mode = #tpu.pipeline_mode<synchronous>, transform_indices = @transform_9, window_bounds = array<i64: 1, 128>}, {transform_indices = @transform_10, window_bounds = array<i64: 1, 64, 128>}]} {
    %c0_i32 = arith.constant 0 : i32
    %0 = arith.cmpi eq, %arg1, %c0_i32 : i32
    %1 = arith.extui %0 : i1 to i32
    %c0_i32_0 = arith.constant 0 : i32
    %2 = arith.cmpi ne, %1, %c0_i32_0 : i32
    scf.if %2 {
      %c0_27 = arith.constant 0 : index
      %c0_28 = arith.constant 0 : index
      %c0_29 = arith.constant 0 : index
      %43 = vector.load %arg3[%c0_27, %c0_28, %c0_29] : memref<1x64x128xf32, #tpu.memory_space<vmem>>, vector<1x64x128xf32>
      %44 = vector.shape_cast %43 : vector<1x64x128xf32> to vector<64x128xf32>
      %45 = arith.truncf %44 : vector<64x128xf32> to vector<64x128xbf16>
      %c0_30 = arith.constant 0 : index
      %c0_31 = arith.constant 0 : index
      %46 = vector.load %arg6[%c0_30, %c0_31] : memref<128x256xbf16, #tpu.memory_space<vmem>>, vector<128x256xbf16>
      %cst_32 = arith.constant dense<0.000000e+00> : vector<64x256xf32>
      %47 = tpu.matmul %45, %46, %cst_32 {dimension_numbers = #tpu.dot_dimension_numbers<[1], [0], [0], [1], [0, 0, 1, 1], [], []>} : vector<64x128xbf16>, vector<128x256xbf16>, vector<64x256xf32> -> vector<64x256xf32>
      %c0_33 = arith.constant 0 : index
      %c0_34 = arith.constant 0 : index
      %48 = vector.load %arg7[%c0_33, %c0_34] : memref<1x256xf32, #tpu.memory_space<vmem>>, vector<1x256xf32>
      %49 = vector.broadcast %48 : vector<1x256xf32> to vector<64x256xf32>
      %50 = arith.addf %47, %49 : vector<64x256xf32>
      %51 = vector.extract_strided_slice %50 {offsets = [0, 0], sizes = [64, 128], strides = [1, 1]} : vector<64x256xf32> to vector<64x128xf32>
      %52 = arith.truncf %51 : vector<64x128xf32> to vector<64x128xbf16>
      %c0_35 = arith.constant 0 : index
      %c0_36 = arith.constant 0 : index
      %53 = vector.load %arg13[%c0_35, %c0_36] : memref<64x128xbf16, #tpu.memory_space<vmem>>, vector<64x128xbf16>
      tpu.vector_store %arg13[%c0_35, %c0_36], %52 {strides = array<i32>} : memref<64x128xbf16, #tpu.memory_space<vmem>>, vector<64x128xbf16>,
      %54 = vector.extract_strided_slice %50 {offsets = [0, 128], sizes = [64, 128], strides = [1, 1]} : vector<64x256xf32> to vector<64x128xf32>
      %55 = arith.truncf %54 : vector<64x128xf32> to vector<64x128xbf16>
      %c0_37 = arith.constant 0 : index
      %c0_38 = arith.constant 0 : index
      %56 = vector.load %arg14[%c0_37, %c0_38] : memref<64x128xbf16, #tpu.memory_space<vmem>>, vector<64x128xbf16>
      tpu.vector_store %arg14[%c0_37, %c0_38], %55 {strides = array<i32>} : memref<64x128xbf16, #tpu.memory_space<vmem>>, vector<64x128xbf16>,
    } else {
    }
    %c0 = arith.constant 0 : index
    %c0_1 = arith.constant 0 : index
    %c0_2 = arith.constant 0 : index
    %3 = vector.load %arg2[%c0, %c0_1, %c0_2] : memref<1x64x128xf32, #tpu.memory_space<vmem>>, vector<1x64x128xf32>
    %4 = vector.shape_cast %3 : vector<1x64x128xf32> to vector<64x128xf32>
    %5 = arith.truncf %4 : vector<64x128xf32> to vector<64x128xbf16>
    %c0_3 = arith.constant 0 : index
    %c0_4 = arith.constant 0 : index
    %6 = vector.load %arg4[%c0_3, %c0_4] : memref<128x128xbf16, #tpu.memory_space<vmem>>, vector<128x128xbf16>
    %cst = arith.constant dense<0.000000e+00> : vector<64x128xf32>
    %7 = tpu.matmul %5, %6, %cst {dimension_numbers = #tpu.dot_dimension_numbers<[1], [0], [0], [1], [0, 0, 1, 1], [], []>} : vector<64x128xbf16>, vector<128x128xbf16>, vector<64x128xf32> -> vector<64x128xf32>
    %c0_5 = arith.constant 0 : index
    %c0_6 = arith.constant 0 : index
    %8 = vector.load %arg5[%c0_5, %c0_6] : memref<1x128xf32, #tpu.memory_space<vmem>>, vector<1x128xf32>
    %9 = vector.broadcast %8 : vector<1x128xf32> to vector<64x128xf32>
    %10 = arith.addf %7, %9 : vector<64x128xf32>
    %11 = arith.truncf %10 : vector<64x128xf32> to vector<64x128xbf16>
    %c0_7 = arith.constant 0 : index
    %c0_8 = arith.constant 0 : index
    %12 = vector.load %arg13[%c0_7, %c0_8] : memref<64x128xbf16, #tpu.memory_space<vmem>>, vector<64x128xbf16>
    %cst_9 = arith.constant dense<0.000000e+00> : vector<64x64xf32>
    %13 = tpu.matmul %11, %12, %cst_9 {dimension_numbers = #tpu.dot_dimension_numbers<[1], [1], [0], [0], [0, 0, 1, 0], [], []>} : vector<64x128xbf16>, vector<64x128xbf16>, vector<64x64xf32> -> vector<64x64xf32>
    %cst_10 = arith.constant dense<0xFF800000> : vector<64xf32>
    %14 = vector.multi_reduction <maximumf>, %13, %cst_10 [1] : vector<64x64xf32> to vector<64xf32>
    %15 = vector.shape_cast %14 : vector<64xf32> to vector<64x1xf32>
    %16 = vector.broadcast %15 : vector<64x1xf32> to vector<64x64xf32>
    %17 = arith.subf %13, %16 : vector<64x64xf32>
    %18 = math.exp %17 : vector<64x64xf32>
    %cst_11 = arith.constant dense<0.000000e+00> : vector<64xf32>
    %19 = vector.multi_reduction <add>, %18, %cst_11 [1] : vector<64x64xf32> to vector<64xf32>
    %20 = vector.shape_cast %19 : vector<64xf32> to vector<64x1xf32>
    %21 = tpu.reciprocal %20 {approx = true} : vector<64x1xf32> -> vector<64x1xf32>
    %22 = vector.broadcast %21 : vector<64x1xf32> to vector<64x64xf32>
    %23 = arith.mulf %18, %22 : vector<64x64xf32>
    %24 = arith.truncf %23 : vector<64x64xf32> to vector<64x64xbf16>
    %c0_12 = arith.constant 0 : index
    %c0_13 = arith.constant 0 : index
    %25 = vector.load %arg14[%c0_12, %c0_13] : memref<64x128xbf16, #tpu.memory_space<vmem>>, vector<64x128xbf16>
    %cst_14 = arith.constant dense<0.000000e+00> : vector<64x128xf32>
    %26 = tpu.matmul %24, %25, %cst_14 {dimension_numbers = #tpu.dot_dimension_numbers<[1], [0], [0], [1], [0, 0, 1, 1], [], []>} : vector<64x64xbf16>, vector<64x128xbf16>, vector<64x128xf32> -> vector<64x128xf32>
    %27 = arith.truncf %26 : vector<64x128xf32> to vector<64x128xbf16>
    %c0_15 = arith.constant 0 : index
    %c0_16 = arith.constant 0 : index
    %28 = vector.load %arg8[%c0_15, %c0_16] : memref<128x128xbf16, #tpu.memory_space<vmem>>, vector<128x128xbf16>
    %cst_17 = arith.constant dense<0.000000e+00> : vector<64x128xf32>
    %29 = tpu.matmul %27, %28, %cst_17 {dimension_numbers = #tpu.dot_dimension_numbers<[1], [0], [0], [1], [0, 0, 1, 1], [], []>} : vector<64x128xbf16>, vector<128x128xbf16>, vector<64x128xf32> -> vector<64x128xf32>
    %c0_18 = arith.constant 0 : index
    %c0_19 = arith.constant 0 : index
    %30 = vector.load %arg9[%c0_18, %c0_19] : memref<1x128xf32, #tpu.memory_space<vmem>>, vector<1x128xf32>
    %31 = vector.broadcast %30 : vector<1x128xf32> to vector<64x128xf32>
    %32 = arith.addf %29, %31 : vector<64x128xf32>
    %c0_20 = arith.constant 0 : index
    %c0_21 = arith.constant 0 : index
    %33 = vector.load %arg10[%c0_20, %c0_21] : memref<1x128xf32, #tpu.memory_space<vmem>>, vector<1x128xf32>
    %34 = vector.broadcast %33 : vector<1x128xf32> to vector<64x128xf32>
    %35 = arith.mulf %32, %34 : vector<64x128xf32>
    %c0_22 = arith.constant 0 : index
    %c0_23 = arith.constant 0 : index
    %36 = vector.load %arg11[%c0_22, %c0_23] : memref<1x128xf32, #tpu.memory_space<vmem>>, vector<1x128xf32>
    %37 = vector.broadcast %36 : vector<1x128xf32> to vector<64x128xf32>
    %38 = arith.addf %35, %37 : vector<64x128xf32>
    %39 = arith.addf %38, %4 : vector<64x128xf32>
    %c0_24 = arith.constant 0 : index
    %c0_25 = arith.constant 0 : index
    %c0_26 = arith.constant 0 : index
    %40 = vector.load %arg12[%c0_24, %c0_25, %c0_26] : memref<1x64x128xf32, #tpu.memory_space<vmem>>, vector<1x64x128xf32>
    %41 = vector.shape_cast %40 : vector<1x64x128xf32> to vector<64x128xf32>
    %42 = vector.shape_cast %39 : vector<64x128xf32> to vector<1x64x128xf32>
    tpu.vector_store %arg12[%c0_24, %c0_25, %c0_26], %42 {strides = array<i32>} : memref<1x64x128xf32, #tpu.memory_space<vmem>>, vector<1x64x128xf32>,
    return
  }
  func.func @transform_0(%arg0: i32, %arg1: i32) -> (i32, i32, i32) {
    %c0_i32 = arith.constant 0 : i32
    %c0_i32_0 = arith.constant 0 : i32
    return %arg0, %arg1, %c0_i32 : i32, i32, i32
  }
  func.func @transform_1(%arg0: i32, %arg1: i32) -> (i32, i32, i32) {
    %c0_i32 = arith.constant 0 : i32
    %c0_i32_0 = arith.constant 0 : i32
    %c0_i32_1 = arith.constant 0 : i32
    return %arg0, %c0_i32, %c0_i32_0 : i32, i32, i32
  }
  func.func @transform_2(%arg0: i32, %arg1: i32) -> (i32, i32) {
    %c0_i32 = arith.constant 0 : i32
    %c0_i32_0 = arith.constant 0 : i32
    %c0_i32_1 = arith.constant 0 : i32
    return %c0_i32, %c0_i32_0 : i32, i32
  }
  func.func @transform_3(%arg0: i32, %arg1: i32) -> (i32, i32) {
    %c0_i32 = arith.constant 0 : i32
    %c0_i32_0 = arith.constant 0 : i32
    %c0_i32_1 = arith.constant 0 : i32
    return %c0_i32, %c0_i32_0 : i32, i32
  }
  func.func @transform_4(%arg0: i32, %arg1: i32) -> (i32, i32) {
    %c0_i32 = arith.constant 0 : i32
    %c0_i32_0 = arith.constant 0 : i32
    %c0_i32_1 = arith.constant 0 : i32
    return %c0_i32, %c0_i32_0 : i32, i32
  }
  func.func @transform_5(%arg0: i32, %arg1: i32) -> (i32, i32) {
    %c0_i32 = arith.constant 0 : i32
    %c0_i32_0 = arith.constant 0 : i32
    %c0_i32_1 = arith.constant 0 : i32
    return %c0_i32, %c0_i32_0 : i32, i32
  }
  func.func @transform_6(%arg0: i32, %arg1: i32) -> (i32, i32) {
    %c0_i32 = arith.constant 0 : i32
    %c0_i32_0 = arith.constant 0 : i32
    %c0_i32_1 = arith.constant 0 : i32
    return %c0_i32, %c0_i32_0 : i32, i32
  }
  func.func @transform_7(%arg0: i32, %arg1: i32) -> (i32, i32) {
    %c0_i32 = arith.constant 0 : i32
    %c0_i32_0 = arith.constant 0 : i32
    %c0_i32_1 = arith.constant 0 : i32
    return %c0_i32, %c0_i32_0 : i32, i32
  }
  func.func @transform_8(%arg0: i32, %arg1: i32) -> (i32, i32) {
    %c0_i32 = arith.constant 0 : i32
    %c0_i32_0 = arith.constant 0 : i32
    %c0_i32_1 = arith.constant 0 : i32
    return %c0_i32, %c0_i32_0 : i32, i32
  }
  func.func @transform_9(%arg0: i32, %arg1: i32) -> (i32, i32) {
    %c0_i32 = arith.constant 0 : i32
    %c0_i32_0 = arith.constant 0 : i32
    %c0_i32_1 = arith.constant 0 : i32
    return %c0_i32, %c0_i32_0 : i32, i32
  }
  func.func @transform_10(%arg0: i32, %arg1: i32) -> (i32, i32, i32) {
    %c0_i32 = arith.constant 0 : i32
    %c0_i32_0 = arith.constant 0 : i32
    return %arg0, %arg1, %c0_i32 : i32, i32, i32
  }
}

</mosaic_0001>

<bundles_post_ra>
// kernel: tpu_custom_call.1
= control target key start
LH: loop header
LB: loop body
LE: loop exit
PB: predicated region body
PF: predicated region fallthrough
CT: control target
= control target key end

     0   :  { %s2524_s0 = inlined_call_operand.hbm [shape: f32[2,256,128], index: 0, kind: input, shape index: {}]   ;;  %s2525_s1 = inlined_call_operand.hbm [shape: f32[2,64,128], index: 1, kind: input, shape index: {}]   ;;  %s2526_s2 = inlined_call_operand.hbm [shape: bf16[128,128], index: 2, kind: input, shape index: {}]   ;;  %s2527_s3 = inlined_call_operand.vmem [shape: f32[1,128], index: 3, kind: input, shape index: {}]   ;;  %s2528_s4 = inlined_call_operand.hbm [shape: bf16[128,256], index: 4, kind: input, shape index: {}]   ;;  %s2529_s5 = inlined_call_operand.vmem [shape: f32[1,256], index: 5, kind: input, shape index: {}]   ;;  %s2530_s6 = inlined_call_operand.hbm [shape: bf16[128,128], index: 6, kind: input, shape index: {}]   ;;  %s2531_s7 = inlined_call_operand.vmem [shape: f32[1,128], index: 7, kind: input, shape index: {}]   ;;  %s2532_s8 = inlined_call_operand.vmem [shape: f32[1,128], index: 8, kind: input, shape index: {}]   ;;  %s2533_s9 = inlined_call_operand.vmem [shape: f32[1,128], index: 9, kind: input, shape index: {}]   ;;  %s2534_s10 = inlined_call_operand.hbm [shape: f32[2,256,128], index: 10, kind: output, shape index: {}]  }
   0x1   :  { %2549 = sst [smem:[#allocation28_spill]] %s2524_s0 }
   0x2   :  { %2550 = sst [smem:[#allocation29_spill]] %s2526_s2 }
   0x3   :  { %2551 = sst [smem:[#allocation30_spill]] %s2528_s4 }
   0x4   :  { %2552 = sst [smem:[#allocation31_spill]] %s2530_s6 }
   0x5   :  { %2553 = sst [smem:[#allocation32_spill]] %s2531_s7 }
   0x6   :  { %2554 = sst [smem:[#allocation33_spill]] %s2532_s8 }
   0x7   :  { %2555 = sst [smem:[#allocation34_spill]] %s2533_s9 }
   0x8   :  { %2556 = sst [smem:[#allocation35_spill]] %s2534_s10 }
   0x9   :  { %15 = vsyncpa [#allocation5], 0 }
   0xa   :  { %17 = vsyncpa [#allocation5 + $0x1], 0 }
   0xb   :  { %18 = vsyncpa [#allocation8], 0 }
   0xc   :  { %20 = vsyncpa [#allocation8 + $0x1], 0 }
   0xd   :  { %21 = vsyncpa [#allocation11], 0 }
   0xe   :  { %22 = vsyncpa [#allocation6], 0 }
   0xf   :  { %24 = vsyncpa [#allocation6 + $0x1], 0  ;;  %s2165_s13 = smov 0   ;;  %s2167_s14 = smov 0  }
  0x10   :  { %s2169_s15 = smov 0   ;;  %s2171_s16 = smov 0  }
  0x11   :  { %s2173_s17 = smov 0   ;;  %s2175_s18 = smov 0  }
  0x12   :  { %s2177_s19 = smov 0   ;;  %s2179_s20 = smov 0  }
  0x13   :  { %s2181_s21 = smov 0   ;;  %s2183_s22 = smov 0  }
  0x14   :  { %s2185_s23 = smov 0  }
  0x15 LB: > { %2557 = sst [smem:[#allocation19_spill]] %s2071_s16  ;;  %s2219_s24 = sadd.s32 4294967295, %s2099_s23   ;;  %s2099_s23 = sphi %s2185_s23, %s30_s23   ;;  %s2095_s22 = sphi %s2183_s22, %s2599_s22   ;;  %s2091_s21 = sphi %s2181_s21, %s2591_s21   ;;  %s2087_s20 = sphi %s2179_s20, %s2598_s20   ;;  %s2083_s19 = sphi %s2177_s19, %s2590_s19   ;;  %s2079_s18 = sphi %s2175_s18, %s2589_s18   ;;  %s2075_s17 = sphi %s2173_s17, %s2597_s17   ;;  %s2071_s16 = sphi %s2171_s16, %s2596_s16   ;;  %s2067_s15 = sphi %s2169_s15, %s2595_s15   ;;  %s2063_s14 = sphi %s2167_s14, %s2594_s14   ;;  %s2059_s13 = sphi %s2165_s13, %s2593_s13  }
  0x16   : > { %2558 = sst [smem:[#allocation20_spill]] %s2079_s18  ;;  %p90_p0 = scmp.ne.s32.totalorder %s2063_s14, %s2059_s13 }
  0x17   : > { %2559 = sst [smem:[#allocation21_spill]] %s2087_s20  ;;  %p65_p1 = scmp.eq.s32.totalorder %s2219_s24, 0 }
  0x18   : > { %2560 = sst [smem:[#allocation22_spill]] %s2091_s21  ;;  %p284_p2 = scmp.eq.s32.totalorder %s2219_s24, 7 }
  0x19   : > { %p1342_p3 = scmp.ge.s32.totalorder %s2099_s23, 1  ;;  %p297_p4 = scmp.lt.s32.totalorder %s2099_s23, 9 }
  0x1a   : > { %p2228_p5 = por %p90_p0, %p65_p1  ;;  %s2563_s2 = sld [smem:[#allocation29_spill]] }
  0x1b   : > { %p2232_p6 = pnand %p1342_p3, %p297_p4  ;;  %s2101_s30 = smov [#allocation9]  }
  0x1c   : > { %s310_s11 = sshll.u32 %s2101_s30, 4  ;;  %s2565_s4 = sld [smem:[#allocation30_spill]]  ;;  %s311_s11 = int_to_ptr.vmem [resolvable:$true] %s310_s11 }
  0x1d   : > { %p1653_p7 = pneg %p2232_p6  ;;  %s2102_s27 = smov 64  }
  0x1e   : > { %s2103_s28 = smov 4   ;;  %s2104_s30 = smov [#allocation10]  }
  0x1f   : > { %p2243_p8 = pnand %p1653_p7, %p65_p1  ;;  %s2566_s6 = sld [smem:[#allocation31_spill]] }
  0x20   : > { %s308_s29 = sshll.u32 %s2563_s2, 4  ;;  %s327_s2 = sshll.u32 %s2104_s30, 4  ;;  %s309_s29 = int_to_ptr.hbm [resolvable:$true] %s308_s29  ;;  %s328_s2 = int_to_ptr.vmem [resolvable:$true] %s327_s2 }
  0x21   : > { %1656 = dma.hbm_to_vmem [thread:$0]  (!%p2243_p8), %s309_s29, 1024, %s311_s11, [#allocation8], %s2102_s27, %s2102_s27, %s2103_s28  }
  0x22   : > { %s325_s20 = sshll.u32 %s2565_s4, 4  ;;  %s2537_s4 = smov 128   ;;  %s326_s20 = int_to_ptr.hbm [resolvable:$true] %s325_s20 }
  0x23   : > { %s2539_s8 = smov 8   ;;  %s2107_s29 = smov [#allocation12]  }
  0x24   : > { %1659 = dma.hbm_to_vmem [thread:$0]  (!%p2243_p8), %s326_s20, 2048, %s328_s2, [#allocation11], %s2537_s4, %s2537_s4, %s2539_s8  }
  0x25   : > { %s342_s13 = sshll.u32 %s2566_s6, 4  ;;  %s344_s11 = sshll.u32 %s2107_s29, 4  ;;  %s343_s13 = int_to_ptr.hbm [resolvable:$true] %s342_s13  ;;  %s345_s11 = int_to_ptr.vmem [resolvable:$true] %s344_s11 }
  0x26   : > { %1662 = dma.hbm_to_vmem [thread:$0]  (!%p2243_p8), %s343_s13, 1024, %s345_s11, [#allocation11], %s2102_s27, %s2102_s27, %s2103_s28  }
  0x27   : > { %s1341_s9 = sadd.s32 4294967294, %s2099_s23   ;;  %s39_s30 = sadd.s32 1, %s2091_s21 }
  0x28   : > { %p40_p9 = scmp.ge.s32.totalorder %s39_s30, 4  ;;  %s42_s10 = sadd.s32 1, %s2095_s22 }
  0x29   : > { %s51_s6 = sadd.s32 1, %s2079_s18  ;;  %p58_p10 = scmp.ne.s32.totalorder %s2079_s18, %s2075_s17 }
  0x2a   : > { %s2601_s30 = smov (%p40_p9, %s39_s30), 0  ;;  %s2603_s10 = smov (!%p40_p9, %s42_s10), %s2095_s22 }
  0x2b   : > { %2567 = sst [smem:[#allocation23_spill]] %s2601_s30  ;;  %s47_s2 = ssub.s32 %s2091_s21, %s2601_s30 }
  0x2c   : > { %p2536_p11 = scmp.eq.s32.totalorder %s2099_s23, 0  ;;  %p44_p12 = scmp.ge.s32.totalorder %s2603_s10, 2 }
  0x2d   : > { %p64_p13 = scmp.ne.s32.totalorder %s2075_s17, %s2071_s16  ;;  %p2284_p3 = por %p284_p2, %p58_p10 }
  0x2e   : > { %p2278_p0 = por %p2536_p11, %p58_p10  ;;  %s2605_s10 = smov (%p44_p12, %s2603_s10), 0 }
  0x2f   : > { %s2569_s12 = scalar_select %p2284_p3, 1, 0 }
  0x30   : > { %2571 = sst [smem:[#allocation25_spill]] %s2605_s10  ;;  %p2292_p4 = por %p65_p1, %p64_p13 }
  0x31   : > { %2570 = sst [smem:[#allocation24_spill]] %s2569_s12  ;;  %p290_p7 = scmp.eq.s32.totalorder %s1341_s9, 7 }
  0x32   : > { %s46_s28 = ssub.s32 %s2095_s22, %s2605_s10  ;;  %p1677_p8 = scmp.lt.s32.totalorder %s2099_s23, 8 }
  0x33   : > { %s48_s13 = sor.u32 %s47_s2, %s46_s28  ;;  %p75_p9 = scmp.eq.s32.totalorder %s46_s28, 0 }
  0x34   : > { %p49_p11 = scmp.eq.s32.totalorder %s48_s13, 0  ;;  %p2299_p2 = por %p290_p7, %p64_p13 }
  0x35   : > { %s367_s11 = sand.u32 1, %s2079_s18   ;;  %s1348_s4 = sshll.u32 %s2091_s21, 3 }
  0x36   : > { %s2573_s29 = scalar_select %p2299_p2, 1, 0 }
  0x37   : > { %s2306_s8 = scalar_select %p49_p11, %s2079_s18, %s51_s6  }
  0x38   : > { %2574 = sst [smem:[#allocation26_spill]] %s2573_s29  ;;  %s1347_s9 = sshll.u32 %s367_s11, 6 }
  0x39   : > { %2575 = sst [smem:[#allocation27_spill]] %s2306_s8  ;;  %s1349_s10 = sshll.u32 %s2095_s22, 5 }
  0x3a   : > { %s376_s30 = sadd.s32 %s1349_s10, %s1348_s4  ;;  %s371_s2 = scalar_lea.vmem [#allocation4], %s1347_s9 }
  0x3b   : > { %s381_s13 = sshll.u32 %s371_s2, 4  ;;  %s1350_s16 = sshll.u32 %s376_s30, 3  ;;  %s382_s13 = int_to_ptr.vmem [resolvable:$true] %s381_s13 }
  0x3c   : > { %s2576_s0 = sld [smem:[#allocation28_spill]]  ;;  %p1664_p10 = pnand %p1677_p8, %p2278_p0 }
  0x3d   : > { %s368_s8 = scalar_lea.sflag [#allocation5], %s367_s11  ;;  %s2577_s18 = smov 8  }
  0x3e   : > { %s2578_s7 = smov 128   ;;  %s391_s4 = sand.u32 1, %s2099_s23  }
  0x3f   : > { %s77_s10 = sadd.s32 1, %s2067_s15  ;;  %p84_p11 = scmp.ne.s32.totalorder %s2067_s15, %s2063_s14 }
  0x40   : > { %s2325_s30 = scalar_select %p75_p9, %s2067_s15, %s77_s10  }
  0x41   : > { %p2579_p12 = scmp.eq.s32.totalorder %s2099_s23, 0  ;;  %s1532_s20 = sshll.u32 %s2095_s22, 6 }
  0x42   : > { %s378_s21 = scalar_lea.hbm %s2576_s0, %s1350_s16  ;;  %s393_s16 = sand.u32 1, %s2067_s15  }
  0x43   : > { %s379_s6 = sshll.u32 %s378_s21, 4  ;;  %p86_p13 = por %p84_p11, %p2579_p12  ;;  %s380_s6 = int_to_ptr.hbm [resolvable:$true] %s379_s6 }
  0x44   : > { %1666 = dma.hbm_to_vmem [thread:$0]  (!%p1664_p10), %s380_s6, 1024, %s382_s13, %s368_s8, %s2578_s7, %s2578_s7, %s2577_s18  }
  0x45   : > { %s1351_s12 = sshll.u32 %s393_s16, 6  ;;  %s400_s11 = scalar_lea.hbm %s2525_s1, %s1532_s20 }
  0x46   : > { %s401_s9 = sshll.u32 %s400_s11, 4  ;;  %s395_s2 = scalar_lea.vmem [#allocation7], %s1351_s12  ;;  %s402_s9 = int_to_ptr.hbm [resolvable:$true] %s401_s9 }
  0x47   : > { %s403_s0 = sshll.u32 %s395_s2, 4  ;;  %p1667_p0 = pnand %p1677_p8, %p86_p13  ;;  %s404_s0 = int_to_ptr.vmem [resolvable:$true] %s403_s0 }
  0x48   : > { %s392_s8 = scalar_lea.sflag [#allocation8], %s391_s4  ;;  %415 = sbr.rel (%p2232_p6) target bundleno = 1191 (0x4a7), region = 60 }
  0x49   : > { %1669 = dma.hbm_to_vmem [thread:$0]  (!%p1667_p0), %s402_s9, 1024, %s404_s0, %s392_s8, %s2578_s7, %s2578_s7, %s2577_s18  }
  0x4a   : > { %s2342_s28 = sand.u32 (!%p2232_p6), 1, %s2075_s17  }
  0x4b   : > { %s1355_s13 = sshll.u32 (!%p2232_p6), %s2342_s28, 6  ;;  %s418_s6 = scalar_lea.sflag (!%p2232_p6), [#allocation5], %s2342_s28 }
  0x4c   : > { %s2346_s10 = scalar_lea.vmem (!%p2232_p6), [#allocation4], %s1355_s13 }
  0x4d   : > { %2038 = dma.done.wait (%p2292_p4), %s418_s6, 1024  }
  0x4e   : > { %2040 = vsyncadd (%p2292_p4), %s418_s6, 4294966272  ;;  %s427_s0 = sand.u32 1, %s2219_s24   ;;  %s429_s7 = sand.u32 1, %s2063_s14  }
  0x4f   : > { %s1356_s18 = sshll.u32 %s429_s7, 6  ;;  %s428_s26 = scalar_lea.sflag [#allocation8], %s427_s0 }
  0x50   : > { %s2354_s4 = scalar_lea.vmem [#allocation7], %s1356_s18 }
  0x51   : > { %2042 = dma.done.wait (%p2228_p5), %s428_s26, 1024  }
  0x52   : > { %2044 = vsyncadd (%p2228_p5), %s428_s26, 4294966272 }
  0x53   : > { %2046 = dma.done.wait (%p65_p1), [#allocation8], 1024  }
  0x54   : > { %2048 = vsyncadd (%p65_p1), [#allocation8], 4294966272 }
  0x55   : > { %2050 = dma.done.wait (%p65_p1), [#allocation11], 3072  }
  0x56   : > { %2052 = vsyncadd (%p65_p1), [#allocation11], 4294964224  ;;  %s2368_s27 = scalar_lea.vmem [#allocation13], %s1355_s13  ;;  %p1361_p6 = scmp.ne.s32.totalorder %s2083_s19, 0 }
  0x58   : > { %495 = sbr.rel (%p1361_p6) target bundleno = 289 (0x121), region = 84 }
  0x5d   : > { %v1420_v0 = vld [vmem:[#allocation10 + $0x70] sm:$0xf]  ;;  %v1548_v1 = vld [vmem:[#allocation10 + $0x74] sm:$0xf0]  ;;  %v1547_v2 = vld [vmem:[#allocation10 + $0x74] sm:$0xf] }
  0x5e   : > { %v1421_v3 = vor.u32 %v1548_v1, %v1420_v0  ;;  %v1422_v4 = vld [vmem:[#allocation10 + $0x78] sm:$0xf0]  ;;  %v1412_v5 = vld [vmem:[#allocation10 + $0x60] sm:$0xf]  ;;  %v1546_v6 = vld [vmem:[#allocation10 + $0x64] sm:$0xf0] }
  0x5f   : > { %v1425_v7 = vor.u32 %v1547_v2, %v1422_v4  ;;  %v1545_v8 = vld [vmem:[#allocation10 + $0x64] sm:$0xf]  ;;  %v1414_v9 = vld [vmem:[#allocation10 + $0x68] sm:$0xf0]  ;;  %v1413_v10 = vor.u32 %v1546_v6, %v1412_v5  ;;  %v1404_v12 = vld [vmem:[#allocation10 + $0x50] sm:$0xf] }
  0x60   : > { %610 = vmatpush.bf16.msra.mxu0 %v1421_v3  ;;  %1619 = vmatpush.bf16.msra.mxu2 %v1421_v3  ;;  %v1417_v11 = vor.u32 %v1545_v8, %v1414_v9  ;;  %v1544_v13 = vld [vmem:[#allocation10 + $0x54] sm:$0xf0]  ;;  %v1543_v14 = vld [vmem:[#allocation10 + $0x54] sm:$0xf]  ;;  %v1406_v15 = vld [vmem:[#allocation10 + $0x58] sm:$0xf0] }
  0x61   : > { %639 = vmatpush.bf16.msra.mxu1 %v1425_v7  ;;  %1627 = vmatpush.bf16.msra.mxu3 %v1425_v7  ;;  %v1405_v16 = vor.u32 %v1544_v13, %v1404_v12  ;;  %v1409_v17 = vor.u32 %v1543_v14, %v1406_v15  ;;  %v1396_v18 = vld [vmem:[#allocation10 + $0x40] sm:$0xf]  ;;  %v1542_v19 = vld [vmem:[#allocation10 + $0x44] sm:$0xf0]  ;;  %v1541_v20 = vld [vmem:[#allocation10 + $0x44] sm:$0xf] }
  0x62   : > { %v1398_v21 = vld [vmem:[#allocation10 + $0x48] sm:$0xf0]  ;;  %v1397_v22 = vor.u32 %v1542_v19, %v1396_v18  ;;  %v1388_v24 = vld [vmem:[#allocation10 + $0x30] sm:$0xf]  ;;  %v1540_v25 = vld [vmem:[#allocation10 + $0x34] sm:$0xf0] }
  0x63   : > { %v1401_v23 = vor.u32 %v1541_v20, %v1398_v21  ;;  %v1539_v26 = vld [vmem:[#allocation10 + $0x34] sm:$0xf]  ;;  %v1390_v27 = vld [vmem:[#allocation10 + $0x38] sm:$0xf0]  ;;  %v1389_v28 = vor.u32 %v1540_v25, %v1388_v24  ;;  %v1380_v30 = vld [vmem:[#allocation10 + $0x20] sm:$0xf] }
  0x64   : > { %611 = vmatpush.bf16.msra.mxu0 %v1413_v10  ;;  %1620 = vmatpush.bf16.msra.mxu2 %v1413_v10  ;;  %v1393_v29 = vor.u32 %v1539_v26, %v1390_v27  ;;  %v1538_v31 = vld [vmem:[#allocation10 + $0x24] sm:$0xf0]  ;;  %v1537_v32 = vld [vmem:[#allocation10 + $0x24] sm:$0xf]  ;;  %v1382_v33 = vld [vmem:[#allocation10 + $0x28] sm:$0xf0] }
  0x65   : > { %640 = vmatpush.bf16.msra.mxu1 %v1417_v11  ;;  %1628 = vmatpush.bf16.msra.mxu3 %v1417_v11  ;;  %v1381_v34 = vor.u32 %v1538_v31, %v1380_v30  ;;  %v1385_v35 = vor.u32 %v1537_v32, %v1382_v33  ;;  %v1372_v36 = vld [vmem:[#allocation10 + $0x10] sm:$0xf]  ;;  %v1536_v37 = vld [vmem:[#allocation10 + $0x14] sm:$0xf0]  ;;  %v1535_v38 = vld [vmem:[#allocation10 + $0x14] sm:$0xf] }
  0x66   : > { %v1374_v39 = vld [vmem:[#allocation10 + $0x18] sm:$0xf0]  ;;  %v1373_v40 = vor.u32 %v1536_v37, %v1372_v36  ;;  %v1364_v42 = vld [vmem:[#allocation10] sm:$0xf]  ;;  %v1534_v43 = vld [vmem:[#allocation10 + $0x4] sm:$0xf0] }
  0x67   : > { %v1377_v41 = vor.u32 %v1535_v38, %v1374_v39  ;;  %v1533_v44 = vld [vmem:[#allocation10 + $0x4] sm:$0xf]  ;;  %v1366_v45 = vld [vmem:[#allocation10 + $0x8] sm:$0xf0]  ;;  %v1365_v47 = vor.u32 %v1534_v43, %v1364_v42  ;;  %v498_v54 = vld [vmem:[%s2354_s4 + $0x10] sm:$0xff] }
  0x68   : > { %612 = vmatpush.bf16.msra.mxu0 %v1405_v16  ;;  %1621 = vmatpush.bf16.msra.mxu2 %v1405_v16  ;;  %v496_v46 = vld [vmem:[%s2354_s4] sm:$0xff]  ;;  %v497_v48 = vld [vmem:[%s2354_s4 + $0x8] sm:$0xff]  ;;  %v1369_v51 = vor.u32 %v1533_v44, %v1366_v45  ;;  %v499_v55 = vld [vmem:[%s2354_s4 + $0x18] sm:$0xff] }
  0x69   : > { %641 = vmatpush.bf16.msra.mxu1 %v1409_v17  ;;  %1629 = vmatpush.bf16.msra.mxu3 %v1409_v17  ;;  %v500_v49 = vld [vmem:[%s2354_s4 + $0x20] sm:$0xff]  ;;  %v501_v50 = vld [vmem:[%s2354_s4 + $0x28] sm:$0xff]  ;;  %v504_v52 = vpack.c.bf16 %v497_v48, %v496_v46  ;;  %v502_v56 = vld [vmem:[%s2354_s4 + $0x30] sm:$0xff]  ;;  %v505_v58 = vpack.c.bf16 %v499_v55, %v498_v54 }
  0x6a   : > { %v506_v53 = vpack.c.bf16 %v501_v50, %v500_v49  ;;  %v503_v57 = vld [vmem:[%s2354_s4 + $0x38] sm:$0xff]  ;;  %v524_v62 = vld [vmem:[%s2529_s5] sm:$0x3] }
  0x6b   : > { %v507_v59 = vpack.c.bf16 %v503_v57, %v502_v56  ;;  %v526_v63 = vperm.slane %v524_v62, 0  ;;  %v527_v0 = vperm.slane %v524_v62, 1 }
  0x6c   : > { %613 = vmatpush.bf16.msra.mxu0 %v1397_v22  ;;  %1622 = vmatpush.bf16.msra.mxu2 %v1397_v22 }
  0x6d   : > { %642 = vmatpush.bf16.msra.mxu1 %v1401_v23  ;;  %1630 = vmatpush.bf16.msra.mxu3 %v1401_v23 }
  0x70   : > { %614 = vmatpush.bf16.msra.mxu0 %v1389_v28  ;;  %1623 = vmatpush.bf16.msra.mxu2 %v1389_v28 }
  0x71   : > { %643 = vmatpush.bf16.msra.mxu1 %v1393_v29  ;;  %1631 = vmatpush.bf16.msra.mxu3 %v1393_v29 }
  0x74   : > { %615 = vmatpush.bf16.msra.mxu0 %v1381_v34  ;;  %1624 = vmatpush.bf16.msra.mxu2 %v1381_v34 }
  0x75   : > { %644 = vmatpush.bf16.msra.mxu1 %v1385_v35  ;;  %1632 = vmatpush.bf16.msra.mxu3 %v1385_v35 }
  0x78   : > { %616 = vmatpush.bf16.msra.mxu0 %v1373_v40  ;;  %1625 = vmatpush.bf16.msra.mxu2 %v1373_v40 }
  0x79   : > { %645 = vmatpush.bf16.msra.mxu1 %v1377_v41  ;;  %1633 = vmatpush.bf16.msra.mxu3 %v1377_v41 }
  0x7c   : > { %617 = vmatpush.bf16.msra.mxu0 %v1365_v47  ;;  %1626 = vmatpush.bf16.msra.mxu2 %v1365_v47 }
  0x7d   : > { %646 = vmatpush.bf16.msra.mxu1 %v1369_v51  ;;  %1634 = vmatpush.bf16.msra.mxu3 %v1369_v51 }
  0x7f   : > { %618 = vmatmul.bf16.vlgmr.msra.gmra.mxu0 %v504_v52  ;;  %628 = vmatmul.bf16.vlgmr.msra.gmra.mxu2 %v506_v53 }
  0x80   : > { %647 = vmatmul.bf16.vlgmr.msra.gmra.mxu1 %v504_v52  ;;  %657 = vmatmul.bf16.vlgmr.msra.gmra.mxu3 %v506_v53 }
  0x8f   : > { %623 = vmatmul.bf16.gmra.mxu0 %v505_v58  ;;  %633 = vmatmul.bf16.gmra.mxu2 %v507_v59 }
  0x90   : > { %652 = vmatmul.bf16.gmra.mxu1 %v505_v58  ;;  %662 = vmatmul.bf16.gmra.mxu3 %v507_v59 }
  0xfc   : > { %v619_v60 = vpop.f32.mrf.mxu0 }
  0xfd   : > { %v648_v61 = vpop.f32.mrf.mxu1  ;;  %v620_v4 = vadd.f32 %v619_v60, %v526_v63 }
  0xfe   : > { %v649_v7 = vadd.f32 %v648_v61, %v527_v0 }
 0x102   : > { %v629_v1 = vpop.f32.mrf.mxu2 }
 0x103   : > { %v658_v2 = vpop.f32.mrf.mxu3  ;;  %v630_v12 = vadd.f32 %v629_v1, %v526_v63 }
 0x104   : > { %v621_v3 = vpop.f32.mrf.mxu0  ;;  %v659_v15 = vadd.f32 %v658_v2, %v527_v0 }
 0x105   : > { %v622_v5 = vadd.f32 %v621_v3, %v526_v63  ;;  %v650_v6 = vpop.f32.mrf.mxu1 }
 0x106   : > { %v651_v8 = vadd.f32 %v650_v6, %v527_v0 }
 0x107   : > { %v1576_v9 = vpack.c.bf16 %v622_v5, %v620_v4 }
 0x108   : > { %v1596_v10 = vpack.c.bf16 %v651_v8, %v649_v7 }
 0x109   : > { %1577 = vst [vmem:[#allocation2 + $0x10] sm:$0xff] %v1576_v9  }
 0x10a   : > { %1597 = vst [vmem:[#allocation3] sm:$0xff] %v1596_v10   ;;  %v631_v11 = vpop.f32.mrf.mxu2 }
 0x10b   : > { %v632_v13 = vadd.f32 %v631_v11, %v526_v63  ;;  %v660_v14 = vpop.f32.mrf.mxu3 }
 0x10c   : > { %v661_v16 = vadd.f32 %v660_v14, %v527_v0  ;;  %v624_v17 = vpop.f32.mrf.mxu0 }
 0x10d   : > { %v1586_v18 = vpack.c.bf16 %v632_v13, %v630_v12  ;;  %v653_v19 = vpop.f32.mrf.mxu1  ;;  %v625_v24 = vadd.f32 %v624_v17, %v526_v63 }
 0x10e   : > { %v1606_v20 = vpack.c.bf16 %v661_v16, %v659_v15  ;;  %v654_v27 = vadd.f32 %v653_v19, %v527_v0 }
 0x10f   : > { %1614 = vst [vmem:[#allocation2 + $0x18] sm:$0xff] %v1586_v18  }
 0x110   : > { %1617 = vst [vmem:[#allocation3 + $0x8] sm:$0xff] %v1606_v20  }
 0x112   : > { %v634_v21 = vpop.f32.mrf.mxu2 }
 0x113   : > { %v663_v22 = vpop.f32.mrf.mxu3  ;;  %v635_v32 = vadd.f32 %v634_v21, %v526_v63 }
 0x114   : > { %v626_v23 = vpop.f32.mrf.mxu0  ;;  %v664_v35 = vadd.f32 %v663_v22, %v527_v0 }
 0x115   : > { %v627_v25 = vadd.f32 %v626_v23, %v526_v63  ;;  %v655_v26 = vpop.f32.mrf.mxu1 }
 0x116   : > { %v656_v28 = vadd.f32 %v655_v26, %v527_v0 }
 0x117   : > { %v1581_v29 = vpack.c.bf16 %v627_v25, %v625_v24 }
 0x118   : > { %v1601_v30 = vpack.c.bf16 %v656_v28, %v654_v27 }
 0x119   : > { %1613 = vst [vmem:[#allocation2] sm:$0xff] %v1581_v29  }
 0x11a   : > { %1616 = vst [vmem:[#allocation3 + $0x18] sm:$0xff] %v1601_v30   ;;  %v636_v31 = vpop.f32.mrf.mxu2 }
 0x11b   : > { %v637_v33 = vadd.f32 %v636_v31, %v526_v63  ;;  %v665_v34 = vpop.f32.mrf.mxu3 }
 0x11c   : > { %v666_v36 = vadd.f32 %v665_v34, %v527_v0 }
 0x11d   : > { %v1591_v37 = vpack.c.bf16 %v637_v33, %v635_v32 }
 0x11e   : > { %v1611_v38 = vpack.c.bf16 %v666_v36, %v664_v35 }
 0x11f   : > { %1615 = vst [vmem:[#allocation2 + $0x8] sm:$0xff] %v1591_v37  }
 0x120   : > { %1618 = vst [vmem:[#allocation3 + $0x10] sm:$0xff] %v1611_v38  }
 0x121 PF: > { %v1556_v39 = vld [vmem:[#allocation9 + $0x38] sm:$0xff]  ;;  %v1555_v40 = vld [vmem:[#allocation9 + $0x30] sm:$0xff]  ;;  %v1554_v41 = vld [vmem:[#allocation9 + $0x28] sm:$0xff]  ;;  %vm874_vm0 = vcmask 523264   ;;  %s2580_s21 = sld [smem:[#allocation32_spill]]  ;;  %s1527_s0 = sshll.u32 %s2083_s19, 3 }
 0x122   : > { %780 = vmatpush.bf16.msra.mxu0 %v1556_v39  ;;  %v1553_v42 = vld [vmem:[#allocation9 + $0x20] sm:$0xff]  ;;  %v1552_v43 = vld [vmem:[#allocation9 + $0x18] sm:$0xff]  ;;  %v1551_v44 = vld [vmem:[#allocation9 + $0x10] sm:$0xff]  ;;  %s2581_s2 = sld [smem:[#allocation33_spill]]  ;;  %s1196_s19 = sshll.u32 %s2368_s27, 4  ;;  %s1197_s19 = int_to_ptr.vmem [resolvable:$true] %s1196_s19 }
 0x123   : > { %v1550_v45 = vld [vmem:[#allocation9 + $0x8] sm:$0xff]  ;;  %v1549_v46 = vld [vmem:[#allocation9] sm:$0xff]  ;;  %v2391_v50 = vld [vmem:[%s2346_s10 + $0x10] sm:$0xff]  ;;  %s2582_s6 = sld [smem:[#allocation34_spill]]  ;;  %s1182_s29 = scalar_lea.sflag [#allocation6], %s2342_s28 }
 0x124   : > { %v2383_v47 = vld [vmem:[%s2346_s10] sm:$0xff]  ;;  %v2386_v48 = vld [vmem:[%s2346_s10 + $0x8] sm:$0xff]  ;;  %v2394_v51 = vld [vmem:[%s2346_s10 + $0x18] sm:$0xff]  ;;  %s2584_s25 = sld [smem:[#allocation35_spill]] }
 0x125   : > { %v708_v49 = vpack.c.bf16 %v2386_v48, %v2383_v47  ;;  %v709_v52 = vpack.c.bf16 %v2394_v51, %v2391_v50  ;;  %v1559_v54 = vld [vmem:[#allocation2 + $0x18] sm:$0xff]  ;;  %v2399_v55 = vld [vmem:[%s2346_s10 + $0x20] sm:$0xff]  ;;  %v2402_v56 = vld [vmem:[%s2346_s10 + $0x28] sm:$0xff] }
 0x126   : > { %781 = vmatpush.bf16.msra.mxu0 %v1555_v40  ;;  %v1560_v53 = vld [vmem:[#allocation2 + $0x8] sm:$0xff]  ;;  %v710_v57 = vpack.c.bf16 %v2402_v56, %v2399_v55  ;;  %v1558_v58 = vld [vmem:[#allocation2] sm:$0xff]  ;;  %v2407_v59 = vld [vmem:[%s2346_s10 + $0x30] sm:$0xff] }
 0x127   : > { %849 = vmatpush.bf16.xpose.msra.mxu1 %v1560_v53  ;;  %v2410_v60 = vld [vmem:[%s2346_s10 + $0x38] sm:$0xff]  ;;  %v1557_v62 = vld [vmem:[#allocation2 + $0x10] sm:$0xff]  ;;  %v1779_v0 = vld [vmem:[%s2527_s3] ss:$0 sm:$0xff]  ;;  %s2583_s10 = sld [smem:[#allocation21_spill]] }
 0x128   : > { %v711_v61 = vpack.c.bf16 %v2410_v60, %v2407_v59 }
 0x12a   : > { %782 = vmatpush.bf16.msra.mxu0 %v1554_v41  ;;  %s1985_s8 = scalar_lea.hbm %s2584_s25, 512 }
 0x12d   : > { %s1528_s7 = sshll.u32 %s2583_s10, 5 }
 0x12e   : > { %783 = vmatpush.bf16.msra.mxu0 %v1553_v42  ;;  %s1193_s18 = sadd.s32 %s1528_s7, %s1527_s0 }
 0x12f   : > { %850 = vmatpush.bf16.xpose.msra.mxu1 %v1559_v54  ;;  %s1529_s26 = sshll.u32 %s1193_s18, 3 }
 0x130   : > { %s1195_s16 = scalar_lea.hbm %s2584_s25, %s1529_s26 }
 0x131   : > { %s1198_s12 = sshll.u32 %s1195_s16, 4  ;;  %s1199_s12 = int_to_ptr.hbm [resolvable:$true] %s1198_s12 }
 0x132   : > { %784 = vmatpush.bf16.msra.mxu0 %v1552_v43 }
 0x136   : > { %785 = vmatpush.bf16.msra.mxu0 %v1551_v44 }
 0x137   : > { %851 = vmatpush.bf16.xpose.msra.mxu1 %v1558_v58 }
 0x13a   : > { %786 = vmatpush.bf16.msra.mxu0 %v1550_v45 }
 0x13e   : > { %787 = vmatpush.bf16.msra.mxu0 %v1549_v46 }
 0x13f   : > { %852 = vmatpush.bf16.xpose.msra.mxu1 %v1557_v62 }
 0x141   : > { %788 = vmatmul.bf16.vlgmr.msra.gmra.mxu0 %v708_v49 }
 0x151   : > { %793 = vmatmul.bf16.gmra.mxu0 %v709_v52 }
 0x161   : > { %798 = vmatmul.bf16.gmra.mxu0 %v710_v57 }
 0x171   : > { %803 = vmatmul.bf16.gmra.mxu0 %v711_v61 }
 0x1be   : > { %v789_v63 = vpop.f32.mrf.mxu0 }
 0x1bf   : > { %v790_v2 = vadd.f32 %v1779_v0, %v789_v63 }
 0x1c6   : > { %v791_v1 = vpop.f32.mrf.mxu0 }
 0x1c7   : > { %v792_v3 = vadd.f32 %v1779_v0, %v791_v1 }
 0x1c9   : > { %v809_v4 = vpack.c.bf16 %v792_v3, %v790_v2 }
 0x1cb   : > { %853 = vmatmul.bf16.vlgmr.msra.gmra.mxu1 %v809_v4 }
 0x1ce   : > { %v794_v5 = vpop.f32.mrf.mxu0 }
 0x1cf   : > { %v795_v7 = vadd.f32 %v1779_v0, %v794_v5 }
 0x1d6   : > { %v796_v6 = vpop.f32.mrf.mxu0 }
 0x1d7   : > { %v797_v8 = vadd.f32 %v1779_v0, %v796_v6 }
 0x1d9   : > { %v810_v9 = vpack.c.bf16 %v797_v8, %v795_v7 }
 0x1db   : > { %858 = vmatmul.bf16.gmra.mxu1 %v810_v9 }
 0x1de   : > { %v799_v10 = vpop.f32.mrf.mxu0 }
 0x1df   : > { %v800_v12 = vadd.f32 %v1779_v0, %v799_v10 }
 0x1e6   : > { %v801_v11 = vpop.f32.mrf.mxu0 }
 0x1e7   : > { %v802_v13 = vadd.f32 %v1779_v0, %v801_v11 }
 0x1e9   : > { %v811_v14 = vpack.c.bf16 %v802_v13, %v800_v12 }
 0x1eb   : > { %863 = vmatmul.bf16.gmra.mxu1 %v811_v14 }
 0x1ee   : > { %v804_v15 = vpop.f32.mrf.mxu0 }
 0x1ef   : > { %v805_v17 = vadd.f32 %v1779_v0, %v804_v15 }
 0x1f6   : > { %v806_v16 = vpop.f32.mrf.mxu0 }
 0x1f7   : > { %v807_v18 = vadd.f32 %v1779_v0, %v806_v16 }
 0x1f9   : > { %v812_v19 = vpack.c.bf16 %v807_v18, %v805_v17 }
 0x1fb   : > { %868 = vmatmul.bf16.gmra.mxu1 %v812_v19 }
 0x248   : > { %v854_v20 = vpop.f32.mrf.mxu1 }
 0x249   : > { %v875_v21 = vsel %vm874_vm0, %v854_v20, -inf }
 0x24a   : > { %876 = vmax.xlane.f32.xlu0 %v875_v21  ;;  %v1563_v21 = vld [vmem:[#allocation3 + $0x8] sm:$0xff] }
 0x250   : > { %v856_v22 = vpop.f32.mrf.mxu1 }
 0x251   : > { %v878_v23 = vsel %vm874_vm0, %v856_v22, -inf }
 0x252   : > { %879 = vmax.xlane.f32.xlu0 %v878_v23  ;;  %v1561_v23 = vld [vmem:[#allocation3] sm:$0xff] }
 0x258   : > { %v859_v24 = vpop.f32.mrf.mxu1 }
 0x259   : > { %v881_v25 = vsel %vm874_vm0, %v859_v24, -inf }
 0x25a   : > { %882 = vmax.xlane.f32.xlu1 %v881_v25 }
 0x260   : > { %v861_v26 = vpop.f32.mrf.mxu1 }
 0x261   : > { %v884_v27 = vsel %vm874_vm0, %v861_v26, -inf }
 0x262   : > { %885 = vmax.xlane.f32.xlu1 %v884_v27 }
 0x268   : > { %v864_v28 = vpop.f32.mrf.mxu1 }
 0x269   : > { %v887_v29 = vsel %vm874_vm0, %v864_v28, -inf }
 0x26a   : > { %888 = vmax.xlane.f32.xlu2 %v887_v29 }
 0x270   : > { %v866_v30 = vpop.f32.mrf.mxu1 }
 0x271   : > { %v890_v31 = vsel %vm874_vm0, %v866_v30, -inf }
 0x272   : > { %891 = vmax.xlane.f32.xlu2 %v890_v31 }
 0x278   : > { %v869_v32 = vpop.f32.mrf.mxu1 }
 0x279   : > { %v893_v33 = vsel %vm874_vm0, %v869_v32, -inf }
 0x27a   : > { %894 = vmax.xlane.f32.xlu0 %v893_v33 }
 0x280   : > { %v871_v34 = vpop.f32.mrf.mxu1 }
 0x281   : > { %v896_v35 = vsel %vm874_vm0, %v871_v34, -inf }
 0x282   : > { %897 = vmax.xlane.f32.xlu1 %v896_v35 }
 0x2bd   : > { %v877_v36 = vpop.xlane.xlu0 %876 }
 0x2be   : > { %v899_v37 = vsub.f32 %v854_v20, %v877_v36  ;;  %v1564_v20 = vld [vmem:[#allocation3 + $0x10] sm:$0xff] }
 0x2bf   : > { %1015 = vmatpush.bf16.msra.mxu2 %v1564_v20  ;;  %v1782_v20 = vld [vmem:[%s2582_s6] ss:$0 sm:$0xff] }
 0x2c0   : > { %v907_v38 = vmul.f32 1.442695, %v899_v37 }
 0x2c2   : > { %1783 = vpow2.f32 %v907_v38 }
 0x2c3   : > { %1016 = vmatpush.bf16.msra.mxu2 %v1563_v21 }
 0x2c5   : > { %v880_v39 = vpop.xlane.xlu0 %879 }
 0x2c6   : > { %v900_v40 = vsub.f32 %v856_v22, %v880_v39  ;;  %v1562_v22 = vld [vmem:[#allocation3 + $0x18] sm:$0xff] }
 0x2c7   : > { %1017 = vmatpush.bf16.msra.mxu2 %v1562_v22  ;;  %v1572_v39 = vld [vmem:[#allocation12 + $0x38] sm:$0xff] }
 0x2c8   : > { %v2425_v41 = vpop.eup %1783  ;;  %v909_v42 = vmul.f32 1.442695, %v900_v40  ;;  %1112 = vmatpush.bf16.msra.mxu3 %v1572_v39  ;;  %v1571_v40 = vld [vmem:[#allocation12 + $0x30] sm:$0xff] }
 0x2c9   : > { %v923_v43 = vsel %vm874_vm0, %v2425_v41, 0.0 }
 0x2ca   : > { %1785 = vpow2.f32 %v909_v42  ;;  %924 = vadd.xlane.f32.xlu2 %v923_v43  ;;  %v1570_v42 = vld [vmem:[#allocation12 + $0x28] sm:$0xff] }
 0x2cb   : > { %1018 = vmatpush.bf16.msra.mxu2 %v1561_v23 }
 0x2cc   : > { %1113 = vmatpush.bf16.msra.mxu3 %v1571_v40 }
 0x2cd   : > { %v883_v44 = vpop.xlane.xlu1 %882 }
 0x2ce   : > { %v901_v45 = vsub.f32 %v859_v24, %v883_v44  ;;  %v1569_v44 = vld [vmem:[#allocation12 + $0x20] sm:$0xff] }
 0x2d0   : > { %v1786_v46 = vpop.eup %1785  ;;  %v911_v49 = vmul.f32 1.442695, %v901_v45  ;;  %1114 = vmatpush.bf16.msra.mxu3 %v1570_v42 }
 0x2d1   : > { %v926_v52 = vsel %vm874_vm0, %v1786_v46, 0.0 }
 0x2d2   : > { %1787 = vpow2.f32 %v911_v49  ;;  %927 = vadd.xlane.f32.xlu0 %v926_v52 }
 0x2d4   : > { %1115 = vmatpush.bf16.msra.mxu3 %v1569_v44 }
 0x2d5   : > { %v886_v53 = vpop.xlane.xlu1 %885 }
 0x2d6   : > { %v902_v54 = vsub.f32 %v861_v26, %v886_v53  ;;  %v1568_v53 = vld [vmem:[#allocation12 + $0x18] sm:$0xff] }
 0x2d8   : > { %v1788_v57 = vpop.eup %1787  ;;  %v913_v58 = vmul.f32 1.442695, %v902_v54  ;;  %1116 = vmatpush.bf16.msra.mxu3 %v1568_v53 }
 0x2d9   : > { %v929_v61 = vsel %vm874_vm0, %v1788_v57, 0.0 }
 0x2da   : > { %1789 = vpow2.f32 %v913_v58  ;;  %930 = vadd.xlane.f32.xlu1 %v929_v61 }
 0x2dd   : > { %v889_v62 = vpop.xlane.xlu2 %888 }
 0x2de   : > { %v903_v63 = vsub.f32 %v864_v28, %v889_v62 }
 0x2e0   : > { %v1790_v0 = vpop.eup %1789  ;;  %v915_v1 = vmul.f32 1.442695, %v903_v63 }
 0x2e1   : > { %v932_v2 = vsel %vm874_vm0, %v1790_v0, 0.0 }
 0x2e2   : > { %1791 = vpow2.f32 %v915_v1  ;;  %933 = vadd.xlane.f32.xlu2 %v932_v2  ;;  %v1567_v1 = vld [vmem:[#allocation12 + $0x10] sm:$0xff]  ;;  %v1566_v2 = vld [vmem:[#allocation12 + $0x8] sm:$0xff] }
 0x2e3   : > { %1117 = vmatpush.bf16.msra.mxu3 %v1567_v1 }
 0x2e5   : > { %v892_v3 = vpop.xlane.xlu2 %891 }
 0x2e6   : > { %v904_v4 = vsub.f32 %v866_v30, %v892_v3  ;;  %v1565_v3 = vld [vmem:[#allocation12] sm:$0xff] }
 0x2e7   : > { %1118 = vmatpush.bf16.msra.mxu3 %v1566_v2 }
 0x2e8   : > { %v2432_v5 = vpop.eup %1791  ;;  %v917_v6 = vmul.f32 1.442695, %v904_v4 }
 0x2e9   : > { %v935_v7 = vsel %vm874_vm0, %v2432_v5, 0.0 }
 0x2ea   : > { %1793 = vpow2.f32 %v917_v6  ;;  %936 = vadd.xlane.f32.xlu0 %v935_v7 }
 0x2eb   : > { %1119 = vmatpush.bf16.msra.mxu3 %v1565_v3 }
 0x2ed   : > { %v895_v8 = vpop.xlane.xlu0 %894 }
 0x2ee   : > { %v905_v9 = vsub.f32 %v869_v32, %v895_v8 }
 0x2f0   : > { %v1794_v10 = vpop.eup %1793  ;;  %v919_v11 = vmul.f32 1.442695, %v905_v9 }
 0x2f1   : > { %v938_v12 = vsel %vm874_vm0, %v1794_v10, 0.0 }
 0x2f2   : > { %1795 = vpow2.f32 %v919_v11  ;;  %939 = vadd.xlane.f32.xlu1 %v938_v12 }
 0x2f5   : > { %v898_v13 = vpop.xlane.xlu1 %897 }
 0x2f6   : > { %v906_v14 = vsub.f32 %v871_v34, %v898_v13 }
 0x2f8   : > { %v1796_v15 = vpop.eup %1795  ;;  %v921_v16 = vmul.f32 1.442695, %v906_v14 }
 0x2f9   : > { %v941_v17 = vsel %vm874_vm0, %v1796_v15, 0.0 }
 0x2fa   : > { %1797 = vpow2.f32 %v921_v16  ;;  %942 = vadd.xlane.f32.xlu2 %v941_v17  ;;  %v1780_v16 = vld [vmem:[%s2580_s21] ss:$0 sm:$0xff]  ;;  %s1979_s21 = sshra.s32 %s1199_s12, 4  ;;  %s1980_s21 = int_to_ptr.hbm [resolvable:$true] %s1979_s21 }
 0x2fb   : > { %v1781_v17 = vld [vmem:[%s2581_s2] ss:$0 sm:$0xff]  ;;  %s1981_s11 = scalar_lea.hbm %s1980_s21, 64  ;;  %p1986_p7 = scmp.lt.s32.totalorder %s1980_s21, %s2584_s25 }
 0x2fc   : > { %p1982_p1 = scmp.ne.s32.totalorder %s1980_s21, %s1981_s11  ;;  %p1987_p8 = scmp.lt.s32.totalorder %s1985_s8, %s1981_s11 }
 0x2fe   : > { %p1983_p5 = pnand %p1982_p1, %p2284_p3  ;;  %p1988_p9 = por %p1987_p8, %p1986_p7 }
 0x300   : > { %v1798_v18 = vpop.eup %1797  ;;  %p1984_p4 = pneg %p1983_p5 }
 0x301   : > { %v944_v19 = vsel %vm874_vm0, %v1798_v18, 0.0 }
 0x302   : > { %945 = vadd.xlane.f32.xlu0 %v944_v19  ;;  %p1989_p10 = pnand %p1988_p9, %p1984_p4 }
 0x33d   : > { %v925_v24 = vpop.xlane.xlu2 %924 }
 0x33e   : > { %1799 = vrcp.f32 %v925_v24 }
 0x344   : > { %v1800_v26 = vpop.eup %1799 }
 0x345   : > { %v928_v25 = vpop.xlane.xlu0 %927  ;;  %v955_v28 = vmul.f32 %v1800_v26, %v2425_v41 }
 0x346   : > { %1801 = vrcp.f32 %v928_v25 }
 0x34c   : > { %v1802_v27 = vpop.eup %1801 }
 0x34d   : > { %v956_v29 = vmul.f32 %v1802_v27, %v1786_v46  ;;  %v931_v31 = vpop.xlane.xlu1 %930 }
 0x34e   : > { %1803 = vrcp.f32 %v931_v31 }
 0x34f   : > { %v963_v30 = vpack.c.bf16 %v956_v29, %v955_v28 }
 0x351   : > { %1490 = vmatmul.msk.bf16.vlgmr.msra.gmra.mxu2 %vm874_vm0, %v963_v30 }
 0x354   : > { %v1804_v33 = vpop.eup %1803 }
 0x355   : > { %v934_v32 = vpop.xlane.xlu2 %933  ;;  %v957_v35 = vmul.f32 %v1804_v33, %v1788_v57 }
 0x356   : > { %1805 = vrcp.f32 %v934_v32 }
 0x35c   : > { %v1806_v34 = vpop.eup %1805 }
 0x35d   : > { %v958_v36 = vmul.f32 %v1806_v34, %v1790_v0  ;;  %v937_v38 = vpop.xlane.xlu0 %936 }
 0x35e   : > { %1807 = vrcp.f32 %v937_v38 }
 0x35f   : > { %v964_v37 = vpack.c.bf16 %v958_v36, %v957_v35 }
 0x361   : > { %1491 = vmatmul.msk.bf16.gmra.mxu2 %vm874_vm0, %v964_v37 }
 0x364   : > { %v1808_v43 = vpop.eup %1807 }
 0x365   : > { %v940_v41 = vpop.xlane.xlu1 %939  ;;  %v959_v46 = vmul.f32 %v1808_v43, %v2432_v5 }
 0x366   : > { %1809 = vrcp.f32 %v940_v41 }
 0x36c   : > { %v1810_v45 = vpop.eup %1809 }
 0x36d   : > { %v960_v49 = vmul.f32 %v1810_v45, %v1794_v10  ;;  %v943_v54 = vpop.xlane.xlu2 %942 }
 0x36e   : > { %1811 = vrcp.f32 %v943_v54 }
 0x36f   : > { %v965_v52 = vpack.c.bf16 %v960_v49, %v959_v46 }
 0x371   : > { %1492 = vmatmul.msk.bf16.gmra.mxu2 %vm874_vm0, %v965_v52 }
 0x374   : > { %v1812_v58 = vpop.eup %1811 }
 0x375   : > { %v946_v57 = vpop.xlane.xlu0 %945  ;;  %v961_v62 = vmul.f32 %v1812_v58, %v1796_v15 }
 0x376   : > { %1813 = vrcp.f32 %v946_v57 }
 0x37c   : > { %v1814_v61 = vpop.eup %1813 }
 0x37d   : > { %v962_v63 = vmul.f32 %v1814_v61, %v1798_v18 }
 0x37f   : > { %v966_v0 = vpack.c.bf16 %v962_v63, %v961_v62 }
 0x381   : > { %1493 = vmatmul.msk.bf16.gmra.mxu2 %vm874_vm0, %v966_v0 }
 0x3d4   : > { %v1020_v4 = vpop.f32.mrf.mxu2 }
 0x3dc   : > { %v1022_v5 = vpop.f32.mrf.mxu2 }
 0x3dd   : > { %v1040_v6 = vpack.c.bf16 %v1022_v5, %v1020_v4 }
 0x3df   : > { %1120 = vmatmul.bf16.vlgmr.msra.gmra.mxu3 %v1040_v6 }
 0x3e4   : > { %v1025_v7 = vpop.f32.mrf.mxu2 }
 0x3ec   : > { %v1027_v8 = vpop.f32.mrf.mxu2 }
 0x3ed   : > { %v1041_v9 = vpack.c.bf16 %v1027_v8, %v1025_v7 }
 0x3ef   : > { %1125 = vmatmul.bf16.gmra.mxu3 %v1041_v9 }
 0x3f4   : > { %v1030_v10 = vpop.f32.mrf.mxu2 }
 0x3fc   : > { %v1032_v11 = vpop.f32.mrf.mxu2 }
 0x3fd   : > { %v1042_v12 = vpack.c.bf16 %v1032_v11, %v1030_v10 }
 0x3ff   : > { %1130 = vmatmul.bf16.gmra.mxu3 %v1042_v12 }
 0x404   : > { %v1035_v13 = vpop.f32.mrf.mxu2 }
 0x40c   : > { %v1037_v14 = vpop.f32.mrf.mxu2 }
 0x40d   : > { %v1043_v15 = vpack.c.bf16 %v1037_v14, %v1035_v13 }
 0x40f   : > { %1135 = vmatmul.bf16.gmra.mxu3 %v1043_v15 }
 0x462   : > { %v1121_v18 = vpop.f32.mrf.mxu3 }
 0x463   : > { %v1122_v19 = vadd.f32 %v1780_v16, %v1121_v18 }
 0x465   : > { %v1145_v21 = vmul.f32 %v1781_v17, %v1122_v19 }
 0x467   : > { %v1157_v22 = vadd.f32 %v1782_v20, %v1145_v21 }
 0x469   : > { %v1165_v23 = vadd.f32 %v1157_v22, %v2383_v47 }
 0x46a   : > { %v1123_v24 = vpop.f32.mrf.mxu3 }
 0x46b   : > { %1173 = vst [vmem:[%s2368_s27] sm:$0xff] %v1165_v23  ;;  %v1124_v25 = vadd.f32 %v1780_v16, %v1123_v24 }
 0x46d   : > { %v1146_v26 = vmul.f32 %v1781_v17, %v1124_v25 }
 0x46f   : > { %v1158_v27 = vadd.f32 %v1782_v20, %v1146_v26 }
 0x471   : > { %v1166_v28 = vadd.f32 %v1158_v27, %v2386_v48 }
 0x472   : > { %v1126_v29 = vpop.f32.mrf.mxu3 }
 0x473   : > { %1174 = vst [vmem:[%s2368_s27 + $0x8] sm:$0xff] %v1166_v28  ;;  %v1127_v30 = vadd.f32 %v1780_v16, %v1126_v29 }
 0x475   : > { %v1147_v31 = vmul.f32 %v1781_v17, %v1127_v30 }
 0x477   : > { %v1159_v32 = vadd.f32 %v1782_v20, %v1147_v31 }
 0x479   : > { %v1167_v33 = vadd.f32 %v1159_v32, %v2391_v50 }
 0x47a   : > { %v1128_v34 = vpop.f32.mrf.mxu3 }
 0x47b   : > { %1175 = vst [vmem:[%s2368_s27 + $0x10] sm:$0xff] %v1167_v33  ;;  %v1129_v35 = vadd.f32 %v1780_v16, %v1128_v34 }
 0x47d   : > { %v1148_v47 = vmul.f32 %v1781_v17, %v1129_v35 }
 0x47f   : > { %v1160_v36 = vadd.f32 %v1782_v20, %v1148_v47 }
 0x481   : > { %v1168_v37 = vadd.f32 %v1160_v36, %v2394_v51 }
 0x482   : > { %v1131_v38 = vpop.f32.mrf.mxu3 }
 0x483   : > { %1176 = vst [vmem:[%s2368_s27 + $0x18] sm:$0xff] %v1168_v37  ;;  %v1132_v48 = vadd.f32 %v1780_v16, %v1131_v38 }
 0x485   : > { %v1149_v39 = vmul.f32 %v1781_v17, %v1132_v48 }
 0x487   : > { %v1161_v40 = vadd.f32 %v1782_v20, %v1149_v39 }
 0x489   : > { %v1169_v41 = vadd.f32 %v1161_v40, %v2399_v55 }
 0x48a   : > { %v1133_v42 = vpop.f32.mrf.mxu3 }
 0x48b   : > { %1177 = vst [vmem:[%s2368_s27 + $0x20] sm:$0xff] %v1169_v41  ;;  %v1134_v50 = vadd.f32 %v1780_v16, %v1133_v42 }
 0x48d   : > { %v1150_v43 = vmul.f32 %v1781_v17, %v1134_v50 }
 0x48f   : > { %v1162_v44 = vadd.f32 %v1782_v20, %v1150_v43 }
 0x491   : > { %v1170_v45 = vadd.f32 %v1162_v44, %v2402_v56 }
 0x492   : > { %v1136_v51 = vpop.f32.mrf.mxu3 }
 0x493   : > { %1178 = vst [vmem:[%s2368_s27 + $0x28] sm:$0xff] %v1170_v45  ;;  %v1137_v46 = vadd.f32 %v1780_v16, %v1136_v51 }
 0x495   : > { %v1151_v49 = vmul.f32 %v1781_v17, %v1137_v46 }
 0x497   : > { %v1163_v52 = vadd.f32 %v1782_v20, %v1151_v49 }
 0x499   : > { %v1171_v55 = vadd.f32 %v1163_v52, %v2407_v59 }
 0x49a   : > { %v1138_v53 = vpop.f32.mrf.mxu3 }
 0x49b   : > { %1179 = vst [vmem:[%s2368_s27 + $0x30] sm:$0xff] %v1171_v55  ;;  %v1139_v56 = vadd.f32 %v1780_v16, %v1138_v53 }
 0x49d   : > { %v1152_v54 = vmul.f32 %v1781_v17, %v1139_v56 }
 0x49f   : > { %v1164_v57 = vadd.f32 %v1782_v20, %v1152_v54 }
 0x4a1   : > { %v1172_v58 = vadd.f32 %v1164_v57, %v2410_v60 }
 0x4a3   : > { %1180 = vst [vmem:[%s2368_s27 + $0x38] sm:$0xff] %v1172_v58 }
 0x4a4   : > { %1992 = shalt.err (!%p1989_p10)
}
 0x4a5   : > { %s2108_s28 = smov 128   ;;  %s2109_s27 = smov 8  }
 0x4a6   : > { %1651 = dma.vmem_to_hbm [thread:$0]  (%p2284_p3), %s1197_s19, 1024, %s1199_s12, %s1182_s29, %s2108_s28, %s2108_s28, %s2109_s27  }
 0x4a7 PF: > { %s2586_s10 = sld [smem:[#allocation19_spill]]  ;;  %p1681_p11 = scmp.ge.s32.totalorder %s2099_s23, 2 }
 0x4a9   : > { %p1671_p12 = pnand %p1681_p11, %p2299_p2 }
 0x4ab   : > { %p1672_p13 = pneg %p1671_p12 }
 0x4ad   : > { %s1213_s7 = sand.u32 1, %s2586_s10  }
 0x4ae   : > { %s1214_s18 = scalar_lea.sflag [#allocation6], %s1213_s7 }
 0x4af   : > { %2054 = dma.done.wait (%p1672_p13), %s1214_s18, 1024  }
 0x4b0   : > { %2056 = vsyncadd (%p1672_p13), %s1214_s18, 4294966272  ;;  %s30_s23 = sadd.s32 1, %s2099_s23   ;;  %s2588_s26 = sld [smem:[#allocation20_spill]] }
 0x4b1   : > { %p27_p0 = scmp.ge.s32.totalorder %s30_s23, 10   ;;  %s2589_s18 = sld [smem:[#allocation27_spill]] }
 0x4b2   : > { %s2590_s19 = sld [smem:[#allocation22_spill]]  ;;  %s2593_s13 = smov %s2063_s14 }
 0x4b3   : > { %s2591_s21 = sld [smem:[#allocation23_spill]]  ;;  %s2594_s14 = smov %s2067_s15 }
 0x4b4   : > { %s2592_s4 = sld [smem:[#allocation25_spill]]  ;;  %s2595_s15 = smov %s2325_s30 }
 0x4b5   : > { %s2596_s16 = smov %s2075_s17  ;;  %s2598_s20 = smov %s2095_s22 }
 0x4b6   : > { %s2597_s17 = smov %s2588_s26  ;;  %29 = sbr.rel (!%p27_p0) target bundleno = 21 (0x15), region = 134 }
 0x4ba   : > { %s2599_s22 = smov %s2592_s4 }
 0x4bb   :  { %1220 = vsyncpa [#allocation5], 1 }
 0x4bc   :  { %1222 = vsyncpa [#allocation5 + $0x1], 1 }
 0x4bd   :  { %1223 = vsyncpa [#allocation8], 1 }
 0x4be   :  { %1225 = vsyncpa [#allocation8 + $0x1], 1 }
 0x4bf   :  { %1226 = vsyncpa [#allocation11], 1 }
 0x4c0   :  { %1227 = vsyncpa [#allocation6], 1 }
 0x4c1   :  { %1229 = vsyncpa [#allocation6 + $0x1], 1 }

</bundles_post_ra>
